<compile_context>
chip_gen: v5e
topology: v5e:2x2
jax: 0.10.0
libtpu: 0.0.40
codegen_flags: <defaults>
</compile_context>

<pallas_src>
import functools

import jax
import jax.numpy as jnp
from jax.experimental import pallas as pl
from jax.experimental.pallas import tpu as pltpu

_LANE = 128
_SUBLANE = 8


def _round_up(n, m):
    return ((n + m - 1) // m) * m


# --------------------------------------------------------------------------- #
# Kernel 1: one-shot per-row whitening of both modality weight slices,
# written transposed to (d, out_pad) so the hot kernel needs no RHS transpose.
# --------------------------------------------------------------------------- #
def _whiten_kernel(eps, w0_ref, w1_ref, ow0t_ref, ow1t_ref):
    def row_orth_t(w):
        w = w.astype(jnp.float32)                       # whitening math in f32
        wc = w - jnp.mean(w, axis=-1, keepdims=True)
        s = jnp.sum(wc * wc, axis=-1, keepdims=True)
        # eps: zero-padded / constant rows whiten to 0 instead of inf/NaN.
        return (wc * jax.lax.rsqrt(s + eps)).T          # (d, out_pad)

    ow0t_ref[...] = row_orth_t(w0_ref[...]).astype(ow0t_ref.dtype)
    ow1t_ref[...] = row_orth_t(w1_ref[...]).astype(ow1t_ref.dtype)


# --------------------------------------------------------------------------- #
# Kernel 2: batch-tiled hot path — two matmuls + weighted fusion epilogue.
# Three lane-dense outputs: out0 / out1 (activation dtype) and fused (f32).
# --------------------------------------------------------------------------- #
def _fusion_kernel(x_ref, y_ref, ow0_ref, ow1_ref, p_ref,
                   o0_ref, o1_ref, of_ref):
    out0 = jnp.dot(x_ref[...], ow0_ref[...], preferred_element_type=jnp.float32)
    out1 = jnp.dot(y_ref[...], ow1_ref[...], preferred_element_type=jnp.float32)

    o0_ref[...] = out0.astype(o0_ref.dtype)
    o1_ref[...] = out1.astype(o1_ref.dtype)
    of_ref[...] = (out0 * p_ref[0:1, :]                 # a0
                   + out1 * p_ref[1:2, :]               # a1
                   + p_ref[2:3, :]).astype(of_ref.dtype)  # bias


# --------------------------------------------------------------------------- #
# One-time parameter prep (hoist/cache this when weights are static).
# --------------------------------------------------------------------------- #
def prepare_orth_fusion_params(weight, bias, a0, a1, d0, *,
                               act_dtype, eps=1e-12):
    out_dim, in_dim = weight.shape
    d1 = in_dim - d0
    out_pad = _round_up(out_dim, _LANE)

    # Split the fused weight into per-modality slices; zero-pad rows to out_pad
    # so everything downstream is lane/tile aligned (tiny tensors).
    w0 = jnp.zeros((out_pad, d0), weight.dtype).at[:out_dim].set(weight[:, :d0])
    w1 = jnp.zeros((out_pad, d1), weight.dtype).at[:out_dim].set(weight[:, d0:])

    ow0t, ow1t = pl.pallas_call(
        functools.partial(_whiten_kernel, eps),
        grid=(1,),
        in_specs=[pl.BlockSpec((out_pad, d0), lambda i: (0, 0)),
                  pl.BlockSpec((out_pad, d1), lambda i: (0, 0))],
        out_specs=(pl.BlockSpec((d0, out_pad), lambda i: (0, 0)),
                   pl.BlockSpec((d1, out_pad), lambda i: (0, 0))),
        out_shape=(jax.ShapeDtypeStruct((d0, out_pad), act_dtype),
                   jax.ShapeDtypeStruct((d1, out_pad), act_dtype)),
    )(w0, w1)

    # Pack a0 / a1 / bias into one (3, out_pad) f32 tile (single DMA per step).
    params = jnp.zeros((3, out_pad), jnp.float32)
    params = params.at[0, :out_dim].set(a0.astype(jnp.float32))
    params = params.at[1, :out_dim].set(a1.astype(jnp.float32))
    params = params.at[2, :out_dim].set(bias.astype(jnp.float32))
    return ow0t, ow1t, params, out_dim


# --------------------------------------------------------------------------- #
# Hot path: batch-tiled fused matmul + epilogue.
# --------------------------------------------------------------------------- #
def orth_fusion_apply(x, y, ow0t, ow1t, params, out_dim, *, batch_tile=1024):
    B, d0 = x.shape
    By, d1 = y.shape
    assert By == B
    out_pad = params.shape[1]
    act_dtype = x.dtype

    # Tile selection: big tiles amortize the ~0.35 us/step pipeline overhead
    # (the kernel is HBM-bound).  If the whole batch would be a single tile but
    # is large, split it in two so the "parallel" grid axis can be sharded
    # across both v7x TensorCores.
    if B > batch_tile:
        tb = batch_tile
    elif B >= 512:
        tb = _round_up(-(-B // 2), _SUBLANE)            # two tiles for megacore
    else:
        tb = B                                          # single full-array tile
    nb = pl.cdiv(B, tb)

    # Rough double-buffered VMEM estimate; raise the scoped limit only when a
    # large batch_tile sweep would exceed the 32 MiB default (still well under
    # v7x's 64 MiB physical VMEM at recommended tile sizes).
    abytes = jnp.dtype(act_dtype).itemsize
    est = (2 * tb * (d0 + d1) * abytes                  # x, y tiles
           + 2 * (d0 + d1) * out_pad * abytes           # resident weights
           + 2 * 3 * out_pad * 4                        # params
           + 2 * tb * out_pad * (2 * abytes + 4))       # out0, out1, fused
    vmem_limit = None
    if est > (28 << 20):
        vmem_limit = min(int(est * 1.25) + (1 << 20), 96 << 20)

    out0, out1, fused = pl.pallas_call(
        _fusion_kernel,
        grid=(nb,),
        in_specs=[
            pl.BlockSpec((tb, d0), lambda i: (i, 0)),        # x tile
            pl.BlockSpec((tb, d1), lambda i: (i, 0)),        # y tile
            pl.BlockSpec((d0, out_pad), lambda i: (0, 0)),   # ow0^T (resident)
            pl.BlockSpec((d1, out_pad), lambda i: (0, 0)),   # ow1^T (resident)
            pl.BlockSpec((3, out_pad), lambda i: (0, 0)),    # a0/a1/bias pack
        ],
        out_specs=(pl.BlockSpec((tb, out_pad), lambda i: (i, 0)),
                   pl.BlockSpec((tb, out_pad), lambda i: (i, 0)),
                   pl.BlockSpec((tb, out_pad), lambda i: (i, 0))),
        out_shape=(jax.ShapeDtypeStruct((B, out_pad), act_dtype),   # out0
                   jax.ShapeDtypeStruct((B, out_pad), act_dtype),   # out1
                   jax.ShapeDtypeStruct((B, out_pad), jnp.float32)),  # fused
        compiler_params=pltpu.CompilerParams(
            dimension_semantics=("parallel",),
            vmem_limit_bytes=vmem_limit),
    )(x, y, ow0t, ow1t, params)

    if out_pad == out_dim:
        return out0, out1, fused
    # Final-boundary slice only (padded columns are exactly 0).
    return out0[:, :out_dim], out1[:, :out_dim], fused[:, :out_dim]


# --------------------------------------------------------------------------- #
# Convenience wrapper (prep + apply).  For repeated forward calls with static
# weights, call prepare_orth_fusion_params() once and reuse its outputs.
# --------------------------------------------------------------------------- #
def orth_fusion(x, y, weight, bias, a0, a1, *, batch_tile=1024, eps=1e-12):
    d0 = x.shape[1]
    assert weight.shape[1] == d0 + y.shape[1]
    ow0t, ow1t, params, out_dim = prepare_orth_fusion_params(
        weight, bias, a0, a1, d0, act_dtype=x.dtype, eps=eps)
    return orth_fusion_apply(x, y, ow0t, ow1t, params, out_dim,
                             batch_tile=batch_tile)


# --------------------------------------------------------------------------- #
# Pure-JAX reference mirroring the PyTorch forward.
# --------------------------------------------------------------------------- #
def _reference(x, y, weight, bias, a0, a1):
    d0 = x.shape[1]
    w0, w1 = weight[:, :d0], weight[:, d0:]

    def row_orth(wv):
        wc = wv - jnp.mean(wv, axis=-1, keepdims=True)
        return wc / jnp.sqrt(jnp.sum(wc * wc, axis=-1, keepdims=True))

    out0 = x @ row_orth(w0).T
    out1 = y @ row_orth(w1).T
    output = out0 * a0[None, :] + out1 * a1[None, :] + bias[None, :]
    return out0, out1, output


if __name__ == "__main__":
    key = jax.random.PRNGKey(0)
    kx, ky, kw, kb = jax.random.split(key, 4)

    # Small shapes consistent with the module: two modalities of width 32,
    # fused to out_dim=16 (real OrthFusion default is [512, 512] -> 100).
    B, d0, d1, out_dim = 2, 32, 32, 16

    x = jax.random.normal(kx, (B, d0), dtype=jnp.float32)
    y = jax.random.normal(ky, (B, d1), dtype=jnp.float32)

    # Deterministic synthetic parameters (shapes from orthogonal_linear.__init__).
    weight = 0.1 * jax.random.normal(kw, (out_dim, d0 + d1), dtype=jnp.float32)
    bias = 0.01 * jax.random.normal(kb, (out_dim,), dtype=jnp.float32)
    a0 = jnp.full((out_dim,), 0.1, dtype=jnp.float32)   # nn.Parameter(ones*0.1)
    a1 = jnp.full((out_dim,), 0.1, dtype=jnp.float32)

    # ---- f32 path ----------------------------------------------------------
    out0, out1, output = orth_fusion(x, y, weight, bias, a0, a1)
    jax.block_until_ready((out0, out1, output))

    r0, r1, rout = _reference(x, y, weight, bias, a0, a1)
    assert jnp.allclose(out0, r0, atol=1e-4, rtol=1e-4)
    assert jnp.allclose(out1, r1, atol=1e-4, rtol=1e-4)
    assert jnp.allclose(output, rout, atol=1e-4, rtol=1e-4)

    # ---- bf16 activation path (bf16 MXU operands, f32 accumulation) --------
    xb = x.astype(jnp.bfloat16)
    yb = y.astype(jnp.bfloat16)
    b0, b1, bout = orth_fusion(xb, yb, weight, bias, a0, a1)
    jax.block_until_ready((b0, b1, bout))

    rb0, rb1, rbout = _reference(xb.astype(jnp.float32), yb.astype(jnp.float32),
                                 weight, bias, a0, a1)
    assert jnp.allclose(b0.astype(jnp.float32), rb0, atol=8e-2, rtol=5e-2)
    assert jnp.allclose(b1.astype(jnp.float32), rb1, atol=8e-2, rtol=5e-2)
    assert jnp.allclose(bout, rbout, atol=8e-2, rtol=5e-2)

    print("KERNEL_OK")
</pallas_src>

<mosaic_0001>
module attributes {stable_mosaic.version = 11 : i64} {
  func.func @_whiten_kernel(%arg0: i32, %arg1: memref<128x32xf32, #tpu.memory_space<vmem>>, %arg2: memref<128x32xf32, #tpu.memory_space<vmem>>, %arg3: memref<32x128xf32, #tpu.memory_space<vmem>>, %arg4: memref<32x128xf32, #tpu.memory_space<vmem>>) attributes {dimension_semantics = [#tpu.dimension_semantics<arbitrary>], iteration_bounds = array<i64: 1>, scalar_prefetch = 0 : i64, scratch_operands = 0 : i64, tpu.core_type = #tpu.core_type<tc>, window_params = [{pipeline_mode = #tpu.pipeline_mode<synchronous>, transform_indices = @transform_0, window_bounds = array<i64: 128, 32>}, {pipeline_mode = #tpu.pipeline_mode<synchronous>, transform_indices = @transform_1, window_bounds = array<i64: 128, 32>}, {pipeline_mode = #tpu.pipeline_mode<synchronous>, transform_indices = @transform_2, window_bounds = array<i64: 32, 128>}, {pipeline_mode = #tpu.pipeline_mode<synchronous>, transform_indices = @transform_3, window_bounds = array<i64: 32, 128>}]} {
    %c0 = arith.constant 0 : index
    %c0_0 = arith.constant 0 : index
    %0 = vector.load %arg1[%c0, %c0_0] : memref<128x32xf32, #tpu.memory_space<vmem>>, vector<128x32xf32>
    %cst = arith.constant dense<0.000000e+00> : vector<128xf32>
    %1 = vector.multi_reduction <add>, %0, %cst [1] : vector<128x32xf32> to vector<128xf32>
    %2 = vector.shape_cast %1 : vector<128xf32> to vector<128x1xf32>
    %cst_1 = arith.constant 3.200000e+01 : f32
    %3 = vector.broadcast %cst_1 : f32 to vector<128x1xf32>
    %4 = arith.divf %2, %3 : vector<128x1xf32>
    %5 = vector.broadcast %4 : vector<128x1xf32> to vector<128x32xf32>
    %6 = arith.subf %0, %5 : vector<128x32xf32>
    %7 = arith.mulf %6, %6 : vector<128x32xf32>
    %cst_2 = arith.constant dense<0.000000e+00> : vector<128xf32>
    %8 = vector.multi_reduction <add>, %7, %cst_2 [1] : vector<128x32xf32> to vector<128xf32>
    %9 = vector.shape_cast %8 : vector<128xf32> to vector<128x1xf32>
    %cst_3 = arith.constant 9.99999996E-13 : f32
    %10 = vector.broadcast %cst_3 : f32 to vector<128x1xf32>
    %11 = arith.addf %9, %10 : vector<128x1xf32>
    %12 = math.rsqrt %11 : vector<128x1xf32>
    %13 = vector.broadcast %12 : vector<128x1xf32> to vector<128x32xf32>
    %14 = arith.mulf %6, %13 : vector<128x32xf32>
    %15 = tpu.transpose %14, [1, 0] : vector<128x32xf32> -> vector<32x128xf32>
    %c0_4 = arith.constant 0 : index
    %c0_5 = arith.constant 0 : index
    %16 = vector.load %arg3[%c0_4, %c0_5] : memref<32x128xf32, #tpu.memory_space<vmem>>, vector<32x128xf32>
    tpu.vector_store %arg3[%c0_4, %c0_5], %15 {strides = array<i32>} : memref<32x128xf32, #tpu.memory_space<vmem>>, vector<32x128xf32>,
    %c0_6 = arith.constant 0 : index
    %c0_7 = arith.constant 0 : index
    %17 = vector.load %arg2[%c0_6, %c0_7] : memref<128x32xf32, #tpu.memory_space<vmem>>, vector<128x32xf32>
    %cst_8 = arith.constant dense<0.000000e+00> : vector<128xf32>
    %18 = vector.multi_reduction <add>, %17, %cst_8 [1] : vector<128x32xf32> to vector<128xf32>
    %19 = vector.shape_cast %18 : vector<128xf32> to vector<128x1xf32>
    %cst_9 = arith.constant 3.200000e+01 : f32
    %20 = vector.broadcast %cst_9 : f32 to vector<128x1xf32>
    %21 = arith.divf %19, %20 : vector<128x1xf32>
    %22 = vector.broadcast %21 : vector<128x1xf32> to vector<128x32xf32>
    %23 = arith.subf %17, %22 : vector<128x32xf32>
    %24 = arith.mulf %23, %23 : vector<128x32xf32>
    %cst_10 = arith.constant dense<0.000000e+00> : vector<128xf32>
    %25 = vector.multi_reduction <add>, %24, %cst_10 [1] : vector<128x32xf32> to vector<128xf32>
    %26 = vector.shape_cast %25 : vector<128xf32> to vector<128x1xf32>
    %cst_11 = arith.constant 9.99999996E-13 : f32
    %27 = vector.broadcast %cst_11 : f32 to vector<128x1xf32>
    %28 = arith.addf %26, %27 : vector<128x1xf32>
    %29 = math.rsqrt %28 : vector<128x1xf32>
    %30 = vector.broadcast %29 : vector<128x1xf32> to vector<128x32xf32>
    %31 = arith.mulf %23, %30 : vector<128x32xf32>
    %32 = tpu.transpose %31, [1, 0] : vector<128x32xf32> -> vector<32x128xf32>
    %c0_12 = arith.constant 0 : index
    %c0_13 = arith.constant 0 : index
    %33 = vector.load %arg4[%c0_12, %c0_13] : memref<32x128xf32, #tpu.memory_space<vmem>>, vector<32x128xf32>
    tpu.vector_store %arg4[%c0_12, %c0_13], %32 {strides = array<i32>} : memref<32x128xf32, #tpu.memory_space<vmem>>, vector<32x128xf32>,
    return
  }
  func.func @transform_0(%arg0: i32) -> (i32, i32) {
    %c0_i32 = arith.constant 0 : i32
    %c0_i32_0 = arith.constant 0 : i32
    %c0_i32_1 = arith.constant 0 : i32
    return %c0_i32, %c0_i32_0 : i32, i32
  }
  func.func @transform_1(%arg0: i32) -> (i32, i32) {
    %c0_i32 = arith.constant 0 : i32
    %c0_i32_0 = arith.constant 0 : i32
    %c0_i32_1 = arith.constant 0 : i32
    return %c0_i32, %c0_i32_0 : i32, i32
  }
  func.func @transform_2(%arg0: i32) -> (i32, i32) {
    %c0_i32 = arith.constant 0 : i32
    %c0_i32_0 = arith.constant 0 : i32
    %c0_i32_1 = arith.constant 0 : i32
    return %c0_i32, %c0_i32_0 : i32, i32
  }
  func.func @transform_3(%arg0: i32) -> (i32, i32) {
    %c0_i32 = arith.constant 0 : i32
    %c0_i32_0 = arith.constant 0 : i32
    %c0_i32_1 = arith.constant 0 : i32
    return %c0_i32, %c0_i32_0 : i32, i32
  }
}

</mosaic_0001>

<bundles_post_ra>
// kernel: tpu_custom_call.1
= control target key start
LH: loop header
LB: loop body
LE: loop exit
PB: predicated region body
PF: predicated region fallthrough
CT: control target
= control target key end

     0   :  { %9 = vsyncpa [#allocation3], 0  ;;  %vm31_vm0 = vcmask 261120   ;;  %s1767_s0 = inlined_call_operand.vmem [shape: f32[128,32], index: 0, kind: input, shape index: {}]   ;;  %s1768_s1 = inlined_call_operand.vmem [shape: f32[128,32], index: 1, kind: input, shape index: {}]   ;;  %s1769_s2 = inlined_call_operand.hbm [shape: f32[32,128], index: 2, kind: output, shape index: {0}]   ;;  %s1770_s3 = inlined_call_operand.hbm [shape: f32[32,128], index: 3, kind: output, shape index: {1}]  }
   0x1   :  { %v986_v0 = vld [vmem:[%s1767_s0 + $0x20] sm:$0xff]  ;;  %v991_v1 = vld [vmem:[%s1767_s0 + $0x10] sm:$0xff]  ;;  %v1007_v6 = vld [vmem:[%s1767_s0 + $0x28] sm:$0xff] }
   0x2   :  { %v996_v2 = vld [vmem:[%s1767_s0] sm:$0xff]  ;;  %v44_v3 = vsel %vm31_vm0, %v986_v0, 0.0  ;;  %v38_v4 = vsel %vm31_vm0, %v991_v1, 0.0  ;;  %v1012_v7 = vld [vmem:[%s1767_s0 + $0x18] sm:$0xff]  ;;  %v1017_v8 = vld [vmem:[%s1767_s0 + $0x8] sm:$0xff] }
   0x3   :  { %v32_v5 = vsel %vm31_vm0, %v996_v2, 0.0  ;;  %45 = vadd.xlane.f32.xlu2 %v44_v3  ;;  %39 = vadd.xlane.f32.xlu1 %v38_v4 }
   0x4   :  { %33 = vadd.xlane.f32.xlu0 %v32_v5 }
   0x5   :  { %10 = vsyncpa [#allocation5], 0  ;;  %v47_v9 = vsel %vm31_vm0, %v1007_v6, 0.0  ;;  %v41_v10 = vsel %vm31_vm0, %v1012_v7, 0.0  ;;  %v35_v11 = vsel %vm31_vm0, %v1017_v8, 0.0  ;;  %v1028_v12 = vld [vmem:[%s1767_s0 + $0x40] sm:$0xff] }
   0x6   :  { %v1033_v13 = vld [vmem:[%s1767_s0 + $0x38] sm:$0xff]  ;;  %v1038_v14 = vld [vmem:[%s1767_s0 + $0x30] sm:$0xff]  ;;  %v56_v15 = vsel %vm31_vm0, %v1028_v12, 0.0  ;;  %v1059_v20 = vld [vmem:[%s1767_s0 + $0x48] sm:$0xff]  ;;  %v958_v52 = vmov 32.0   ;;  %s805_s23 = sshll.u32 %s1769_s2, 4  ;;  %s806_s23 = int_to_ptr.hbm [resolvable:$true] %s805_s23 }
   0x7   :  { %v53_v16 = vsel %vm31_vm0, %v1033_v13, 0.0  ;;  %v50_v17 = vsel %vm31_vm0, %v1038_v14, 0.0  ;;  %v1049_v18 = vld [vmem:[%s1767_s0 + $0x58] sm:$0xff]  ;;  %v1054_v19 = vld [vmem:[%s1767_s0 + $0x50] sm:$0xff]  ;;  %v59_v23 = vsel %vm31_vm0, %v1059_v20, 0.0  ;;  %v1075_v25 = vld [vmem:[%s1767_s0 + $0x68] sm:$0xff]  ;;  %840 = vrcp.f32 %v958_v52 }
   0x8   :  { %v65_v21 = vsel %vm31_vm0, %v1049_v18, 0.0  ;;  %v62_v22 = vsel %vm31_vm0, %v1054_v19, 0.0  ;;  %v1070_v24 = vld [vmem:[%s1767_s0 + $0x70] sm:$0xff]  ;;  %v1080_v26 = vld [vmem:[%s1767_s0 + $0x60] sm:$0xff]  ;;  %v71_v28 = vsel %vm31_vm0, %v1075_v25, 0.0  ;;  %v1091_v30 = vld [vmem:[%s1768_s1 + $0x8] sm:$0xff] }
   0x9   :  { %v74_v27 = vsel %vm31_vm0, %v1070_v24, 0.0  ;;  %v68_v29 = vsel %vm31_vm0, %v1080_v26, 0.0  ;;  %v1096_v31 = vld [vmem:[%s1767_s0 + $0x78] sm:$0xff]  ;;  %v430_v32 = vsel %vm31_vm0, %v1091_v30, 0.0  ;;  %v1110_v35 = vld [vmem:[%s1768_s1] sm:$0xff]  ;;  %v1119_v38 = vld [vmem:[%s1768_s1 + $0x28] sm:$0xff] }
   0xa   :  { %v77_v33 = vsel %vm31_vm0, %v1096_v31, 0.0  ;;  %v1105_v34 = vld [vmem:[%s1768_s1 + $0x18] sm:$0xff]  ;;  %v427_v37 = vsel %vm31_vm0, %v1110_v35, 0.0  ;;  %v1124_v39 = vld [vmem:[%s1768_s1 + $0x10] sm:$0xff]  ;;  %v442_v40 = vsel %vm31_vm0, %v1119_v38, 0.0  ;;  %v1138_v43 = vld [vmem:[%s1768_s1 + $0x20] sm:$0xff] }
   0xb   :  { %48 = vadd.xlane.f32.xlu2 %v47_v9  ;;  %42 = vadd.xlane.f32.xlu1 %v41_v10  ;;  %v436_v36 = vsel %vm31_vm0, %v1105_v34, 0.0  ;;  %v433_v41 = vsel %vm31_vm0, %v1124_v39, 0.0  ;;  %v1133_v42 = vld [vmem:[%s1768_s1 + $0x38] sm:$0xff]  ;;  %v439_v45 = vsel %vm31_vm0, %v1138_v43, 0.0  ;;  %v1147_v46 = vld [vmem:[%s1768_s1 + $0x48] sm:$0xff]  ;;  %v1152_v47 = vld [vmem:[%s1768_s1 + $0x30] sm:$0xff] }
   0xc   :  { %36 = vadd.xlane.f32.xlu0 %v35_v11  ;;  %v448_v44 = vsel %vm31_vm0, %v1133_v42, 0.0  ;;  %v454_v48 = vsel %vm31_vm0, %v1147_v46, 0.0  ;;  %v445_v49 = vsel %vm31_vm0, %v1152_v47, 0.0  ;;  %v1161_v50 = vld [vmem:[%s1768_s1 + $0x40] sm:$0xff]  ;;  %s960_s24 = smov 128   ;;  %s961_s25 = smov 8  }
   0xd   :  { %v451_v51 = vsel %vm31_vm0, %v1161_v50, 0.0  ;;  %v841_v53 = vpop.eup %840  ;;  %s962_s26 = smov [#allocation4]   ;;  %s818_s30 = sshll.u32 %s1770_s3, 4  ;;  %s819_s30 = int_to_ptr.hbm [resolvable:$true] %s818_s30 }
   0xe   :  { %v81_v54 = vmul.f32 32.0, %v841_v53  ;;  %vm85_vm1 = vweird.f32 %v841_v53  ;;  %s816_s27 = sshll.u32 %s962_s26, 4  ;;  %s817_s27 = int_to_ptr.vmem [resolvable:$true] %s816_s27 }
  0x10   :  { %v82_v55 = vsub.f32 1.0, %v81_v54 }
  0x12   :  { %v83_v56 = vmul.f32 %v841_v53, %v82_v55 }
  0x13   :  { %57 = vadd.xlane.f32.xlu2 %v56_v15  ;;  %54 = vadd.xlane.f32.xlu1 %v53_v16 }
  0x14   :  { %51 = vadd.xlane.f32.xlu0 %v50_v17  ;;  %v84_v57 = vadd.f32 %v841_v53, %v83_v56 }
  0x16   :  { %v1165_v58 = vsel %vm85_vm1, %v841_v53, %v84_v57 }
  0x1b   :  { %66 = vadd.xlane.f32.xlu2 %v65_v21  ;;  %63 = vadd.xlane.f32.xlu1 %v62_v22 }
  0x1c   :  { %60 = vadd.xlane.f32.xlu0 %v59_v23 }
  0x23   :  { %75 = vadd.xlane.f32.xlu2 %v74_v27  ;;  %72 = vadd.xlane.f32.xlu1 %v71_v28 }
  0x24   :  { %69 = vadd.xlane.f32.xlu0 %v68_v29 }
  0x2b   :  { %431 = vadd.xlane.f32.xlu1 %v430_v32 }
  0x2c   :  { %78 = vadd.xlane.f32.xlu0 %v77_v33 }
  0x33   :  { %437 = vadd.xlane.f32.xlu1 %v436_v36 }
  0x34   :  { %428 = vadd.xlane.f32.xlu0 %v427_v37 }
  0x3b   :  { %443 = vadd.xlane.f32.xlu1 %v442_v40 }
  0x3c   :  { %434 = vadd.xlane.f32.xlu0 %v433_v41 }
  0x43   :  { %449 = vadd.xlane.f32.xlu1 %v448_v44 }
  0x44   :  { %440 = vadd.xlane.f32.xlu0 %v439_v45 }
  0x4b   :  { %455 = vadd.xlane.f32.xlu1 %v454_v48 }
  0x4c   :  { %446 = vadd.xlane.f32.xlu0 %v445_v49 }
  0x54   :  { %452 = vadd.xlane.f32.xlu0 %v451_v51 }
  0x76   :  { %v46_v59 = vpop.xlane.xlu2 %45  ;;  %v40_v60 = vpop.xlane.xlu1 %39 }
  0x77   :  { %v89_v61 = vmul.f32 %v1165_v58, %v40_v60  ;;  %v34_v62 = vpop.xlane.xlu0 %33  ;;  %v91_v27 = vmul.f32 %v1165_v58, %v46_v59 }
  0x78   :  { %v87_v63 = vmul.f32 %v1165_v58, %v34_v62 }
  0x79   :  { %v1170_v3 = vsub.f32 %v991_v1, %v89_v61 }
  0x7a   :  { %v1173_v4 = vsub.f32 %v996_v2, %v87_v63 }
  0x7b   :  { %v121_v5 = vmul.f32 %v1170_v3, %v1170_v3 }
  0x7c   :  { %v119_v9 = vmul.f32 %v1173_v4, %v1173_v4 }
  0x7d   :  { %v141_v10 = vsel %vm31_vm0, %v121_v5, 0.0 }
  0x7e   :  { %v49_v11 = vpop.xlane.xlu2 %48  ;;  %v43_v15 = vpop.xlane.xlu1 %42  ;;  %142 = vadd.xlane.f32.xlu0 %v141_v10  ;;  %v135_v16 = vsel %vm31_vm0, %v119_v9, 0.0 }
  0x7f   :  { %v92_v17 = vmul.f32 %v1165_v58, %v49_v11  ;;  %v90_v1 = vmul.f32 %v1165_v58, %v43_v15  ;;  %136 = vadd.xlane.f32.xlu1 %v135_v16  ;;  %v37_v2 = vpop.xlane.xlu0 %36 }
  0x80   :  { %v88_v21 = vmul.f32 %v1165_v58, %v37_v2 }
  0x81   :  { %v1185_v22 = vsub.f32 %v1007_v6, %v92_v17  ;;  %v1188_v23 = vsub.f32 %v1012_v7, %v90_v1  ;;  %v1203_v7 = vsub.f32 %v986_v0, %v91_v27 }
  0x82   :  { %v1192_v28 = vsub.f32 %v1017_v8, %v88_v21 }
  0x83   :  { %v124_v29 = vmul.f32 %v1185_v22, %v1185_v22  ;;  %v122_v32 = vmul.f32 %v1188_v23, %v1188_v23  ;;  %v123_v51 = vmul.f32 %v1203_v7, %v1203_v7 }
  0x84   :  { %v120_v33 = vmul.f32 %v1192_v28, %v1192_v28 }
  0x85   :  { %v150_v6 = vsel %vm31_vm0, %v124_v29, 0.0  ;;  %v144_v36 = vsel %vm31_vm0, %v122_v32, 0.0 }
  0x86   :  { %v58_v37 = vpop.xlane.xlu2 %57  ;;  %151 = vadd.xlane.f32.xlu0 %v150_v6  ;;  %v138_v8 = vsel %vm31_vm0, %v120_v33, 0.0  ;;  %v55_v40 = vpop.xlane.xlu1 %54 }
  0x87   :  { %v95_v41 = vmul.f32 %v1165_v58, %v58_v37  ;;  %145 = vadd.xlane.f32.xlu1 %v144_v36  ;;  %139 = vadd.xlane.f32.xlu2 %v138_v8  ;;  %v52_v44 = vpop.xlane.xlu0 %51  ;;  %v94_v48 = vmul.f32 %v1165_v58, %v55_v40 }
  0x88   :  { %v93_v45 = vmul.f32 %v1165_v58, %v52_v44 }
  0x89   :  { %v1210_v49 = vsub.f32 %v1028_v12, %v95_v41  ;;  %v1220_v53 = vsub.f32 %v1033_v13, %v94_v48  ;;  %v147_v12 = vsel %vm31_vm0, %v123_v51, 0.0 }
  0x8a   :  { %v1213_v0 = vsub.f32 %v1038_v14, %v93_v45 }
  0x8b   :  { %v127_v52 = vmul.f32 %v1210_v49, %v1210_v49  ;;  %v126_v62 = vmul.f32 %v1220_v53, %v1220_v53 }
  0x8c   :  { %v125_v54 = vmul.f32 %v1213_v0, %v1213_v0 }
  0x8d   :  { %v159_v55 = vsel %vm31_vm0, %v127_v52, 0.0  ;;  %v156_v11 = vsel %vm31_vm0, %v126_v62, 0.0 }
  0x8e   :  { %v67_v56 = vpop.xlane.xlu2 %66  ;;  %160 = vadd.xlane.f32.xlu0 %v159_v55  ;;  %v153_v14 = vsel %vm31_vm0, %v125_v54, 0.0  ;;  %v64_v57 = vpop.xlane.xlu1 %63  ;;  %v1289_v55 = vld [vmem:[%s1768_s1 + $0x60] sm:$0xff] }
  0x8f   :  { %v98_v59 = vmul.f32 %v1165_v58, %v67_v56  ;;  %148 = vadd.xlane.f32.xlu2 %v147_v12  ;;  %154 = vadd.xlane.f32.xlu1 %v153_v14  ;;  %v61_v60 = vpop.xlane.xlu0 %60  ;;  %v97_v61 = vmul.f32 %v1165_v58, %v64_v57  ;;  %v463_v56 = vsel %vm31_vm0, %v1289_v55, 0.0 }
  0x90   :  { %v96_v13 = vmul.f32 %v1165_v58, %v61_v60  ;;  %v1304_v60 = vld [vmem:[%s1768_s1 + $0x70] sm:$0xff] }
  0x91   :  { %v1233_v63 = vsub.f32 %v1049_v18, %v98_v59  ;;  %v1241_v10 = vsub.f32 %v1054_v19, %v97_v61  ;;  %v469_v61 = vsel %vm31_vm0, %v1304_v60, 0.0 }
  0x92   :  { %v1236_v5 = vsub.f32 %v1059_v20, %v96_v13  ;;  %v1309_v13 = vld [vmem:[%s1768_s1 + $0x68] sm:$0xff] }
  0x93   :  { %v130_v9 = vmul.f32 %v1233_v63, %v1233_v63  ;;  %v129_v27 = vmul.f32 %v1241_v10, %v1241_v10 }
  0x94   :  { %v128_v15 = vmul.f32 %v1236_v5, %v1236_v5 }
  0x95   :  { %v168_v16 = vsel %vm31_vm0, %v130_v9, 0.0  ;;  %v165_v36 = vsel %vm31_vm0, %v129_v27, 0.0  ;;  %v466_v9 = vsel %vm31_vm0, %v1309_v13, 0.0 }
  0x96   :  { %v76_v17 = vpop.xlane.xlu2 %75  ;;  %169 = vadd.xlane.f32.xlu0 %v168_v16  ;;  %v162_v18 = vsel %vm31_vm0, %v128_v15, 0.0  ;;  %v73_v1 = vpop.xlane.xlu1 %72 }
  0x97   :  { %v101_v20 = vmul.f32 %v1165_v58, %v76_v17  ;;  %157 = vadd.xlane.f32.xlu2 %v156_v11  ;;  %163 = vadd.xlane.f32.xlu1 %v162_v18  ;;  %v70_v2 = vpop.xlane.xlu0 %69  ;;  %v100_v21 = vmul.f32 %v1165_v58, %v73_v1  ;;  %v1325_v1 = vld [vmem:[%s1768_s1 + $0x78] sm:$0xff] }
  0x98   :  { %v99_v19 = vmul.f32 %v1165_v58, %v70_v2 }
  0x99   :  { %v1254_v29 = vsub.f32 %v1070_v24, %v101_v20  ;;  %v1262_v6 = vsub.f32 %v1075_v25, %v100_v21  ;;  %v1273_v25 = vld [vmem:[%s1768_s1 + $0x50] sm:$0xff] }
  0x9a   :  { %v1257_v32 = vsub.f32 %v1080_v26, %v99_v19  ;;  %v457_v45 = vsel %vm31_vm0, %v1273_v25, 0.0  ;;  %v472_v19 = vsel %vm31_vm0, %v1325_v1, 0.0 }
  0x9b   :  { %v133_v33 = vmul.f32 %v1254_v29, %v1254_v29  ;;  %v132_v41 = vmul.f32 %v1262_v6, %v1262_v6 }
  0x9c   :  { %v131_v37 = vmul.f32 %v1257_v32, %v1257_v32 }
  0x9d   :  { %v177_v8 = vsel %vm31_vm0, %v133_v33, 0.0  ;;  %v174_v48 = vsel %vm31_vm0, %v132_v41, 0.0 }
  0x9e   :  { %178 = vadd.xlane.f32.xlu0 %v177_v8  ;;  %v171_v24 = vsel %vm31_vm0, %v131_v37, 0.0  ;;  %v432_v14 = vpop.xlane.xlu1 %431 }
  0x9f   :  { %166 = vadd.xlane.f32.xlu2 %v165_v36  ;;  %172 = vadd.xlane.f32.xlu1 %v171_v24  ;;  %v79_v26 = vpop.xlane.xlu0 %78  ;;  %v476_v17 = vmul.f32 %v432_v14, %v1165_v58 }
  0xa0   :  { %v102_v40 = vmul.f32 %v1165_v58, %v79_v26 }
  0xa1   :  { %v1332_v2 = vsub.f32 %v1091_v30, %v476_v17 }
  0xa2   :  { %v1278_v44 = vsub.f32 %v1096_v31, %v102_v40  ;;  %v1294_v31 = vld [vmem:[%s1768_s1 + $0x58] sm:$0xff]  ;;  %s959_s1 = smov [#allocation2]  }
  0xa3   :  { %v460_v12 = vsel %vm31_vm0, %v1294_v31, 0.0  ;;  %v508_v36 = vmul.f32 %v1332_v2, %v1332_v2  ;;  %s803_s21 = sshll.u32 %s959_s1, 4  ;;  %s804_s21 = int_to_ptr.vmem [resolvable:$true] %s803_s21 }
  0xa4   :  { %v134_v51 = vmul.f32 %v1278_v44, %v1278_v44 }
  0xa5   :  { %v526_v26 = vsel %vm31_vm0, %v508_v36, 0.0 }
  0xa6   :  { %458 = vadd.xlane.f32.xlu0 %v457_v45  ;;  %v180_v52 = vsel %vm31_vm0, %v134_v51, 0.0  ;;  %v438_v16 = vpop.xlane.xlu1 %437 }
  0xa7   :  { %175 = vadd.xlane.f32.xlu2 %v174_v48  ;;  %181 = vadd.xlane.f32.xlu1 %v180_v52  ;;  %v429_v54 = vpop.xlane.xlu0 %428  ;;  %v478_v33 = vmul.f32 %v438_v16, %v1165_v58 }
  0xa8   :  { %v475_v57 = vmul.f32 %v429_v54, %v1165_v58 }
  0xa9   :  { %v1347_v24 = vsub.f32 %v1105_v34, %v478_v33 }
  0xaa   :  { %v1314_v62 = vsub.f32 %v1110_v35, %v475_v57 }
  0xab   :  { %v510_v48 = vmul.f32 %v1347_v24, %v1347_v24 }
  0xac   :  { %v507_v11 = vmul.f32 %v1314_v62, %v1314_v62 }
  0xad   :  { %v532_v54 = vsel %vm31_vm0, %v510_v48, 0.0 }
  0xae   :  { %464 = vadd.xlane.f32.xlu0 %v463_v56  ;;  %v523_v35 = vsel %vm31_vm0, %v507_v11, 0.0 }
  0xaf   :  { %461 = vadd.xlane.f32.xlu1 %v460_v12  ;;  %v435_v59 = vpop.xlane.xlu0 %434 }
  0xb0   :  { %v477_v15 = vmul.f32 %v435_v59, %v1165_v58 }
  0xb2   :  { %v1329_v20 = vsub.f32 %v1124_v39, %v477_v15  ;;  %v444_v39 = vpop.xlane.xlu1 %443 }
  0xb3   :  { %v480_v45 = vmul.f32 %v444_v39, %v1165_v58 }
  0xb4   :  { %v509_v21 = vmul.f32 %v1329_v20, %v1329_v20 }
  0xb5   :  { %v1361_v52 = vsub.f32 %v1119_v38, %v480_v45 }
  0xb6   :  { %470 = vadd.xlane.f32.xlu0 %v469_v61  ;;  %v529_v30 = vsel %vm31_vm0, %v509_v21, 0.0 }
  0xb7   :  { %467 = vadd.xlane.f32.xlu1 %v466_v9  ;;  %v441_v18 = vpop.xlane.xlu0 %440 }
  0xb8   :  { %v479_v27 = vmul.f32 %v441_v18, %v1165_v58 }
  0xba   :  { %v1344_v8 = vsub.f32 %v1138_v43, %v479_v27  ;;  %v450_v34 = vpop.xlane.xlu1 %449 }
  0xbb   :  { %v482_v57 = vmul.f32 %v450_v34, %v1165_v58 }
  0xbc   :  { %v511_v40 = vmul.f32 %v1344_v8, %v1344_v8 }
  0xbd   :  { %v1375_v61 = vsub.f32 %v1133_v42, %v482_v57 }
  0xbe   :  { %524 = vadd.xlane.f32.xlu0 %v523_v35  ;;  %v535_v43 = vsel %vm31_vm0, %v511_v40, 0.0 }
  0xbf   :  { %473 = vadd.xlane.f32.xlu1 %v472_v19  ;;  %v447_v37 = vpop.xlane.xlu0 %446  ;;  %v514_v17 = vmul.f32 %v1375_v61, %v1375_v61 }
  0xc0   :  { %v481_v41 = vmul.f32 %v447_v37, %v1165_v58 }
  0xc1   :  { %v544_v42 = vsel %vm31_vm0, %v514_v17, 0.0 }
  0xc2   :  { %v1358_v51 = vsub.f32 %v1152_v47, %v481_v41  ;;  %v512_v47 = vmul.f32 %v1361_v52, %v1361_v52  ;;  %v456_v11 = vpop.xlane.xlu1 %455 }
  0xc3   :  { %v484_v16 = vmul.f32 %v456_v11, %v1165_v58 }
  0xc4   :  { %v513_v12 = vmul.f32 %v1358_v51, %v1358_v51  ;;  %v538_v9 = vsel %vm31_vm0, %v512_v47, 0.0 }
  0xc6   :  { %530 = vadd.xlane.f32.xlu0 %v529_v30  ;;  %v541_v59 = vsel %vm31_vm0, %v513_v12, 0.0 }
  0xc7   :  { %527 = vadd.xlane.f32.xlu1 %v526_v26  ;;  %v453_v56 = vpop.xlane.xlu0 %452 }
  0xc8   :  { %v483_v14 = vmul.f32 %v453_v56, %v1165_v58 }
  0xca   :  { %v1372_v38 = vsub.f32 %v1161_v50, %v483_v14  ;;  %v1385_v50 = vsub.f32 %v1147_v46, %v484_v16 }
  0xcc   :  { %v515_v15 = vmul.f32 %v1372_v38, %v1372_v38  ;;  %v516_v35 = vmul.f32 %v1385_v50, %v1385_v50 }
  0xce   :  { %536 = vadd.xlane.f32.xlu0 %v535_v43  ;;  %v547_v18 = vsel %vm31_vm0, %v515_v15, 0.0  ;;  %v550_v19 = vsel %vm31_vm0, %v516_v35, 0.0 }
  0xcf   :  { %533 = vadd.xlane.f32.xlu1 %v532_v54 }
  0xd6   :  { %542 = vadd.xlane.f32.xlu0 %v541_v59 }
  0xd7   :  { %539 = vadd.xlane.f32.xlu1 %v538_v9 }
  0xde   :  { %548 = vadd.xlane.f32.xlu0 %v547_v18 }
  0xdf   :  { %545 = vadd.xlane.f32.xlu1 %v544_v42 }
  0xe7   :  { %551 = vadd.xlane.f32.xlu1 %v550_v19 }
  0xf1   :  { %v143_v21 = vpop.xlane.xlu0 %142 }
  0xf2   :  { %v137_v27 = vpop.xlane.xlu1 %136  ;;  %v185_v36 = vadd.f32 1e-12, %v143_v21 }
  0xf3   :  { %v183_v33 = vadd.f32 1e-12, %v137_v27 }
  0xf4   :  { %vm225_vm9 = vweird.f32 %v185_v36 }
  0xf5   :  { %842 = vrsqrt.f32 %v183_v33  ;;  %vm205_vm3 = vweird.f32 %v183_v33 }
  0xf6   :  { %844 = vrsqrt.f32 %v185_v36 }
  0xf9   :  { %v152_v39 = vpop.xlane.xlu0 %151 }
  0xfa   :  { %v146_v37 = vpop.xlane.xlu1 %145  ;;  %v140_v46 = vpop.xlane.xlu2 %139 }
  0xfb   :  { %v843_v30 = vpop.eup %842  ;;  %v184_v26 = vadd.f32 1e-12, %v140_v46  ;;  %v1391_v45 = vadd.f32 1e-12, %v146_v37 }
  0xfc   :  { %v200_v40 = vmul.f32 %v843_v30, %v183_v33  ;;  %v845_v48 = vpop.eup %844  ;;  %vm206_vm2 = vweird.f32 %v843_v30  ;;  %v1405_v33 = vadd.f32 1e-12, %v152_v39 }
  0xfd   :  { %846 = vrsqrt.f32 %v184_v26  ;;  %v220_v12 = vmul.f32 %v845_v48, %v185_v36  ;;  %vm207_vm4 = vmor %vm205_vm3, %vm206_vm2  ;;  %vm215_vm6 = vweird.f32 %v184_v26  ;;  %vm226_vm8 = vweird.f32 %v845_v48 }
  0xfe   :  { %v201_v41 = vmul.f32 %v843_v30, %v200_v40  ;;  %848 = vrsqrt.f32 %v1391_v45  ;;  %vm227_vm10 = vmor %vm225_vm9, %vm226_vm8  ;;  %vm235_vm12 = vweird.f32 %v1391_v45  ;;  %vm255_vm3 = vweird.f32 %v1405_v33 }
  0xff   :  { %v221_v9 = vmul.f32 %v845_v48, %v220_v12 }
 0x100   :  { %v202_v43 = vmul.f32 0.5, %v201_v41 }
 0x101   :  { %v1393_v34 = vpop.xlane.xlu0 %160  ;;  %v222_v21 = vmul.f32 0.5, %v221_v9 }
 0x102   :  { %v155_v54 = vpop.xlane.xlu1 %154  ;;  %v203_v56 = vsub.f32 1.5, %v202_v43  ;;  %v149_v14 = vpop.xlane.xlu2 %148 }
 0x103   :  { %v847_v57 = vpop.eup %846  ;;  %v1396_v59 = vadd.f32 1e-12, %v149_v14  ;;  %v223_v46 = vsub.f32 1.5, %v222_v21 }
 0x104   :  { %v210_v47 = vmul.f32 %v847_v57, %v184_v26  ;;  %v204_v15 = vmul.f32 %v843_v30, %v203_v56  ;;  %v849_v16 = vpop.eup %848  ;;  %vm216_vm5 = vweird.f32 %v847_v57  ;;  %v1417_v26 = vadd.f32 1e-12, %v155_v54 }
 0x105   :  { %850 = vrsqrt.f32 %v1396_v59  ;;  %v230_v27 = vmul.f32 %v849_v16, %v1391_v45  ;;  %vm217_vm7 = vmor %vm215_vm6, %vm216_vm5  ;;  %vm236_vm11 = vweird.f32 %v849_v16  ;;  %vm245_vm15 = vweird.f32 %v1396_v59 }
 0x106   :  { %v211_v11 = vmul.f32 %v847_v57, %v210_v47  ;;  %v208_v18 = vsel %vm207_vm4, %v843_v30, %v204_v15  ;;  %852 = vrsqrt.f32 %v1405_v33  ;;  %v224_v47 = vmul.f32 %v845_v48, %v223_v46  ;;  %vm237_vm13 = vmor %vm235_vm12, %vm236_vm11 }
 0x107   :  { %v359_v35 = vmul.f32 %v208_v18, %v1173_v4  ;;  %v231_v40 = vmul.f32 %v849_v16, %v230_v27  ;;  %854 = vrsqrt.f32 %v1417_v26  ;;  %vm265_vm6 = vweird.f32 %v1417_v26 }
 0x108   :  { %v212_v17 = vmul.f32 0.5, %v211_v11  ;;  %v228_v15 = vsel %vm227_vm10, %v845_v48, %v224_v47 }
 0x109   :  { %v1398_v42 = vpop.xlane.xlu0 %169  ;;  %375 = vxpose.xlu2.b32.start [1/16] (narrow) %v359_v35, 32  ;;  %v232_v14 = vmul.f32 0.5, %v231_v40  ;;  %v361_v18 = vmul.f32 %v228_v15, %v1170_v3 }
 0x10a   :  { %v1402_v19 = vpop.xlane.xlu1 %163  ;;  %v213_v37 = vsub.f32 1.5, %v212_v17  ;;  %v158_v21 = vpop.xlane.xlu2 %157 }
 0x10b   :  { %v1407_v41 = vpop.eup %850  ;;  %v1434_v46 = vadd.f32 1e-12, %v158_v21 }
 0x10c   :  { %v214_v30 = vmul.f32 %v847_v57, %v213_v37  ;;  %v240_v39 = vmul.f32 %v1407_v41, %v1396_v59  ;;  %v1419_v9 = vpop.eup %852  ;;  %vm246_vm14 = vweird.f32 %v1407_v41 }
 0x10d   :  { %v250_v17 = vmul.f32 %v1419_v9, %v1405_v33  ;;  %856 = vrsqrt.f32 %v1434_v46  ;;  %vm247_vm1 = vmor %vm245_vm15, %vm246_vm14  ;;  %vm256_vm2 = vweird.f32 %v1419_v9  ;;  %vm275_vm8 = vweird.f32 %v1434_v46 }
 0x10e   :  { %v218_v4 = vsel %vm217_vm7, %v847_v57, %v214_v30  ;;  %v233_v57 = vsub.f32 1.5, %v232_v14  ;;  %v241_v11 = vmul.f32 %v1407_v41, %v240_v39  ;;  %vm257_vm4 = vmor %vm255_vm3, %vm256_vm2 }
 0x10f   :  { %v360_v56 = vmul.f32 %v218_v4, %v1192_v28  ;;  %v251_v48 = vmul.f32 %v1419_v9, %v250_v17  ;;  %v1438_v4 = vpop.eup %854 }
 0x110   :  { %v242_v54 = vmul.f32 0.5, %v241_v11  ;;  %v234_v27 = vmul.f32 %v849_v16, %v233_v57  ;;  %vm266_vm5 = vweird.f32 %v1438_v4 }
 0x111   :  { %v1410_v43 = vpop.xlane.xlu0 %178  ;;  %376 = vxpose.xlu2.b32.cont [2/16] (narrow) %v360_v56, 32  ;;  %v252_v39 = vmul.f32 0.5, %v251_v48  ;;  %vm267_vm7 = vmor %vm265_vm6, %vm266_vm5 }
 0x112   :  { %v1413_v12 = vpop.xlane.xlu1 %172  ;;  %v243_v3 = vsub.f32 1.5, %v242_v54  ;;  %v238_v40 = vsel %vm237_vm13, %v849_v16, %v234_v27  ;;  %v260_v16 = vmul.f32 %v1438_v4, %v1417_v26 }
 0x113   :  { %v1465_v21 = vpop.eup %856 }
 0x114   :  { %v244_v11 = vmul.f32 %v1407_v41, %v243_v3  ;;  %vm276_vm9 = vweird.f32 %v1465_v21 }
 0x115   :  { %vm277_vm10 = vmor %vm275_vm8, %vm276_vm9 }
 0x116   :  { %v248_v54 = vsel %vm247_vm1, %v1407_v41, %v244_v11 }
 0x117   :  { %v363_v27 = vmul.f32 %v248_v54, %v1203_v7  ;;  %v1482_v7 = vadd.f32 1e-12, %v1402_v19 }
 0x119   :  { %v459_v28 = vpop.xlane.xlu0 %458  ;;  %377 = vxpose.xlu2.b32.cont [3/16] (narrow) %v361_v18, 32  ;;  %v253_v18 = vsub.f32 1.5, %v252_v39  ;;  %vm295_vm14 = vweird.f32 %v1482_v7 }
 0x11a   :  { %v1426_v35 = vpop.xlane.xlu1 %181  ;;  %v485_v36 = vmul.f32 %v459_v28, %v1165_v58 }
 0x11c   :  { %v1430_v37 = vsub.f32 %v1273_v25, %v485_v36  ;;  %v362_v25 = vmul.f32 %v238_v40, %v1188_v23  ;;  %v1454_v23 = vadd.f32 1e-12, %v1393_v34  ;;  %v261_v36 = vmul.f32 %v1438_v4, %v260_v16 }
 0x11d   :  { %v270_v40 = vmul.f32 %v1465_v21, %v1434_v46 }
 0x11e   :  { %v517_v30 = vmul.f32 %v1430_v37, %v1430_v37  ;;  %858 = vrsqrt.f32 %v1454_v23  ;;  %v262_v3 = vmul.f32 0.5, %v261_v36  ;;  %vm285_vm11 = vweird.f32 %v1454_v23 }
 0x11f   :  { %860 = vrsqrt.f32 %v1482_v7 }
 0x120   :  { %v553_v56 = vsel %vm31_vm0, %v517_v30, 0.0 }
 0x121   :  { %v465_v14 = vpop.xlane.xlu0 %464  ;;  %554 = vadd.xlane.f32.xlu0 %v553_v56  ;;  %378 = vxpose.xlu2.b32.cont [4/16] (narrow) %v362_v25, 32  ;;  %v254_v56 = vmul.f32 %v1419_v9, %v253_v18 }
 0x122   :  { %v462_v45 = vpop.xlane.xlu1 %461  ;;  %v487_v47 = vmul.f32 %v465_v14, %v1165_v58 }
 0x123   :  { %v486_v57 = vmul.f32 %v462_v45, %v1165_v58  ;;  %v258_v16 = vsel %vm257_vm4, %v1419_v9, %v254_v56 }
 0x124   :  { %v1450_v15 = vsub.f32 %v1289_v55, %v487_v47  ;;  %v1491_v45 = vpop.eup %858  ;;  %v263_v47 = vsub.f32 1.5, %v262_v3  ;;  %v1528_v3 = vadd.f32 1e-12, %v1398_v42 }
 0x125   :  { %v1457_v28 = vsub.f32 %v1294_v31, %v486_v57  ;;  %v280_v11 = vmul.f32 %v1491_v45, %v1454_v23 }
 0x126   :  { %v519_v17 = vmul.f32 %v1450_v15, %v1450_v15 }
 0x127   :  { %v518_v55 = vmul.f32 %v1457_v28, %v1457_v28 }
 0x128   :  { %v559_v34 = vsel %vm31_vm0, %v519_v17, 0.0  ;;  %v364_v17 = vmul.f32 %v258_v16, %v1185_v22 }
 0x129   :  { %v556_v31 = vsel %vm31_vm0, %v518_v55, 0.0  ;;  %v471_v59 = vpop.xlane.xlu0 %470  ;;  %560 = vadd.xlane.f32.xlu0 %v559_v34  ;;  %379 = vxpose.xlu2.b32.cont [5/16] (narrow) %v363_v27, 32  ;;  %v264_v55 = vmul.f32 %v1438_v4, %v263_v47  ;;  %v281_v27 = vmul.f32 %v1491_v45, %v280_v11  ;;  %v1549_v11 = vadd.f32 1e-12, %v1413_v12 }
 0x12a   :  { %557 = vadd.xlane.f32.xlu1 %v556_v31  ;;  %v468_v48 = vpop.xlane.xlu1 %467  ;;  %v489_v41 = vmul.f32 %v471_v59, %v1165_v58  ;;  %v1514_v59 = vpop.eup %860 }
 0x12b   :  { %v488_v30 = vmul.f32 %v468_v48, %v1165_v58  ;;  %v290_v26 = vmul.f32 %v1514_v59, %v1482_v7  ;;  %vm296_vm13 = vweird.f32 %v1514_v59 }
 0x12c   :  { %v1478_v14 = vsub.f32 %v1304_v60, %v489_v41  ;;  %v271_v60 = vmul.f32 %v1465_v21, %v270_v40  ;;  %vm297_vm15 = vmor %vm295_vm14, %vm296_vm13 }
 0x12d   :  { %v1485_v39 = vsub.f32 %v1309_v13, %v488_v30  ;;  %v167_v13 = vpop.xlane.xlu2 %166  ;;  %v282_v30 = vmul.f32 0.5, %v281_v27  ;;  %v291_v47 = vmul.f32 %v1514_v59, %v290_v26 }
 0x12e   :  { %v521_v25 = vmul.f32 %v1478_v14, %v1478_v14  ;;  %v272_v9 = vmul.f32 0.5, %v271_v60  ;;  %v1506_v34 = vadd.f32 1e-12, %v167_v13 }
 0x12f   :  { %v520_v19 = vmul.f32 %v1485_v39, %v1485_v39  ;;  %v283_v42 = vsub.f32 1.5, %v282_v30 }
 0x130   :  { %v565_v33 = vsel %vm31_vm0, %v521_v25, 0.0  ;;  %v273_v48 = vsub.f32 1.5, %v272_v9  ;;  %862 = vrsqrt.f32 %v1506_v34  ;;  %vm305_vm1 = vweird.f32 %v1506_v34 }
 0x131   :  { %v562_v57 = vsel %vm31_vm0, %v520_v19, 0.0  ;;  %566 = vadd.xlane.f32.xlu0 %v565_v33  ;;  %v525_v36 = vpop.xlane.xlu0 %524  ;;  %380 = vxpose.xlu2.b32.cont [6/16] (narrow) %v364_v17, 32  ;;  %v292_v19 = vmul.f32 0.5, %v291_v47  ;;  %v284_v17 = vmul.f32 %v1491_v45, %v283_v42 }
 0x132   :  { %563 = vadd.xlane.f32.xlu1 %v562_v57  ;;  %v474_v18 = vpop.xlane.xlu1 %473  ;;  %v1512_v22 = vadd.f32 1e-12, %v525_v36  ;;  %v274_v56 = vmul.f32 %v1465_v21, %v273_v48 }
 0x133   :  { %v490_v54 = vmul.f32 %v474_v18, %v1165_v58  ;;  %v268_v58 = vsel %vm267_vm7, %v1438_v4, %v264_v55  ;;  %v293_v9 = vsub.f32 1.5, %v292_v19 }
 0x134   :  { %864 = vrsqrt.f32 %v1512_v22  ;;  %v365_v4 = vmul.f32 %v268_v58, %v1213_v0  ;;  %v278_v0 = vsel %vm277_vm10, %v1465_v21, %v274_v56  ;;  %vm593_vm3 = vweird.f32 %v1512_v22 }
 0x135   :  { %v1510_v31 = vsub.f32 %v1325_v1, %v490_v54  ;;  %866 = vrsqrt.f32 %v1528_v3  ;;  %v366_v57 = vmul.f32 %v278_v0, %v1220_v53  ;;  %v176_v27 = vpop.xlane.xlu2 %175  ;;  %v294_v26 = vmul.f32 %v1514_v59, %v293_v9 }
 0x136   :  { %v1534_v25 = vpop.eup %862  ;;  %vm315_vm10 = vweird.f32 %v1528_v3 }
 0x137   :  { %v522_v41 = vmul.f32 %v1510_v31, %v1510_v31  ;;  %v300_v16 = vmul.f32 %v1534_v25, %v1506_v34  ;;  %vm306_vm2 = vweird.f32 %v1534_v25 }
 0x138   :  { %vm1592_vm5 = vmor %vm305_vm1, %vm306_vm2  ;;  %vm325_vm1 = vweird.f32 %v1549_v11 }
 0x139   :  { %v568_v1 = vsel %vm31_vm0, %v522_v41, 0.0  ;;  %381 = vxpose.xlu2.b32.cont [7/16] (narrow) %v365_v4, 32  ;;  %v531_v13 = vpop.xlane.xlu0 %530  ;;  %vm286_vm0 = vweird.f32 %v1491_v45  ;;  %v301_v18 = vmul.f32 %v1534_v25, %v300_v16 }
 0x13a   :  { %569 = vadd.xlane.f32.xlu1 %v568_v1  ;;  %v528_v40 = vpop.xlane.xlu1 %527  ;;  %v1538_v60 = vpop.eup %864  ;;  %v1556_v36 = vadd.f32 1e-12, %v531_v13  ;;  %vm287_vm12 = vmor %vm285_vm11, %vm286_vm0 }
 0x13b   :  { %v1532_v46 = vadd.f32 1e-12, %v528_v40  ;;  %v588_v33 = vmul.f32 %v1538_v60, %v1512_v22  ;;  %v1552_v21 = vpop.eup %866  ;;  %v288_v55 = vsel %vm287_vm12, %v1491_v45, %v284_v17  ;;  %v302_v23 = vmul.f32 0.5, %v301_v18 }
 0x13c   :  { %v310_v12 = vmul.f32 %v1552_v21, %v1528_v3  ;;  %v367_v1 = vmul.f32 %v288_v55, %v1210_v49  ;;  %v1573_v45 = vadd.f32 1e-12, %v176_v27  ;;  %v298_v49 = vsel %vm297_vm15, %v1514_v59, %v294_v26 }
 0x13d   :  { %868 = vrsqrt.f32 %v1532_v46  ;;  %v589_v53 = vmul.f32 %v1538_v60, %v588_v33  ;;  %v303_v56 = vsub.f32 1.5, %v302_v23  ;;  %vm594_vm4 = vweird.f32 %v1538_v60 }
 0x13e   :  { %870 = vrsqrt.f32 %v1549_v11  ;;  %v311_v4 = vmul.f32 %v1552_v21, %v310_v12  ;;  %v368_v59 = vmul.f32 %v298_v49, %v1236_v5  ;;  %v1601_v22 = vadd.f32 1e-12, %v1410_v43  ;;  %vm1603_vm6 = vmor %vm593_vm3, %vm594_vm4 }
 0x13f   :  { %872 = vrsqrt.f32 %v1556_v36  ;;  %v590_v48 = vmul.f32 0.5, %v589_v53  ;;  %vm316_vm7 = vweird.f32 %v1552_v21  ;;  %vm603_vm8 = vweird.f32 %v1532_v46 }
 0x140   :  { %v312_v16 = vmul.f32 0.5, %v311_v4  ;;  %874 = vrsqrt.f32 %v1573_v45  ;;  %vm1637_vm0 = vmor %vm315_vm10, %vm316_vm7  ;;  %vm613_vm12 = vweird.f32 %v1556_v36  ;;  %vm335_vm3 = vweird.f32 %v1573_v45 }
 0x141   :  { %382 = vxpose.xlu2.b32.cont [8/16] (narrow) %v366_v57, 32  ;;  %v591_v47 = vsub.f32 1.5, %v590_v48  ;;  %v537_v13 = vpop.xlane.xlu0 %536  ;;  %v304_v57 = vmul.f32 %v1534_v25, %v303_v56 }
 0x142   :  { %v534_v41 = vpop.xlane.xlu1 %533  ;;  %v313_v5 = vsub.f32 1.5, %v312_v16  ;;  %v1608_v53 = vadd.f32 1e-12, %v537_v13 }
 0x143   :  { %v1559_v54 = vpop.eup %868  ;;  %v1577_v30 = vadd.f32 1e-12, %v534_v41  ;;  %v592_v17 = vmul.f32 %v1538_v60, %v591_v47  ;;  %v308_v43 = vsel %vm1592_vm5, %v1534_v25, %v304_v57 }
 0x144   :  { %v598_v58 = vmul.f32 %v1559_v54, %v1532_v46  ;;  %v1575_v40 = vpop.eup %870  ;;  %v314_v41 = vmul.f32 %v1552_v21, %v313_v5  ;;  %vm604_vm9 = vweird.f32 %v1559_v54 }
 0x145   :  { %v1581_v0 = vpop.eup %872  ;;  %v320_v7 = vmul.f32 %v1575_v40, %v1549_v11  ;;  %876 = vrsqrt.f32 %v1577_v30  ;;  %v596_v27 = vsel %vm1603_vm6, %v1538_v60, %v592_v17  ;;  %vm605_vm11 = vmor %vm603_vm8, %vm604_vm9  ;;  %vm326_vm14 = vweird.f32 %v1575_v40 }
 0x146   :  { %v599_v42 = vmul.f32 %v1559_v54, %v598_v58  ;;  %v608_v33 = vmul.f32 %v1581_v0, %v1556_v36  ;;  %v1610_v12 = vpop.eup %874  ;;  %878 = vrsqrt.f32 %v1601_v22  ;;  %v747_v25 = vmul.f32 %v596_v27, %v1314_v62  ;;  %vm327_vm2 = vmor %vm325_vm1, %vm326_vm14 }
 0x147   :  { %v321_v9 = vmul.f32 %v1575_v40, %v320_v7  ;;  %880 = vrsqrt.f32 %v1608_v53  ;;  %v330_v47 = vmul.f32 %v1610_v12, %v1573_v45  ;;  %v1642_v62 = vadd.f32 1e-12, %v1426_v35 }
 0x148   :  { %v600_v34 = vmul.f32 0.5, %v599_v42  ;;  %v609_v23 = vmul.f32 %v1581_v0, %v608_v33  ;;  %vm614_vm13 = vweird.f32 %v1581_v0  ;;  %vm336_vm4 = vweird.f32 %v1610_v12 }
 0x149   :  { %383 = vxpose.xlu2.b32.cont [9/16] (narrow) %v367_v1, 32  ;;  %v322_v58 = vmul.f32 0.5, %v321_v9  ;;  %v369_v1 = vmul.f32 %v308_v43, %v1241_v10  ;;  %882 = vrsqrt.f32 %v1642_v62  ;;  %v543_v57 = vpop.xlane.xlu0 %542  ;;  %vm1671_vm15 = vmor %vm613_vm12, %vm614_vm13  ;;  %vm623_vm5 = vweird.f32 %v1577_v30 }
 0x14a   :  { %v601_v55 = vsub.f32 1.5, %v600_v34  ;;  %v610_v60 = vmul.f32 0.5, %v609_v23  ;;  %v540_v4 = vpop.xlane.xlu1 %539  ;;  %v331_v34 = vmul.f32 %v1610_v12, %v330_v47  ;;  %vm1703_vm7 = vmor %vm335_vm3, %vm336_vm4  ;;  %vm633_vm9 = vweird.f32 %v1608_v53 }
 0x14b   :  { %v1619_v48 = vpop.eup %876  ;;  %v323_v49 = vsub.f32 1.5, %v322_v58  ;;  %v1648_v3 = vadd.f32 1e-12, %v540_v4  ;;  %vm345_vm12 = vweird.f32 %v1601_v22 }
 0x14c   :  { %v618_v26 = vmul.f32 %v1619_v48, %v1577_v30  ;;  %v602_v56 = vmul.f32 %v1559_v54, %v601_v55  ;;  %v1644_v42 = vpop.eup %878  ;;  %v611_v16 = vsub.f32 1.5, %v610_v60  ;;  %v332_v36 = vmul.f32 0.5, %v331_v34 }
 0x14d   :  { %v1655_v35 = vpop.eup %880  ;;  %v340_v33 = vmul.f32 %v1644_v42, %v1601_v22  ;;  %884 = vrsqrt.f32 %v1648_v3  ;;  %v324_v17 = vmul.f32 %v1575_v40, %v323_v49  ;;  %vm624_vm6 = vweird.f32 %v1619_v48 }
 0x14e   :  { %v619_v7 = vmul.f32 %v1619_v48, %v618_v26  ;;  %v606_v19 = vsel %vm605_vm11, %v1559_v54, %v602_v56  ;;  %v628_v13 = vmul.f32 %v1655_v35, %v1608_v53  ;;  %v612_v18 = vmul.f32 %v1581_v0, %v611_v16  ;;  %vm625_vm8 = vmor %vm623_vm5, %vm624_vm6 }
 0x14f   :  { %v1681_v9 = vpop.eup %882  ;;  %v328_v43 = vsel %vm327_vm2, %v1575_v40, %v324_v17  ;;  %v333_v58 = vsub.f32 1.5, %v332_v36  ;;  %vm634_vm10 = vweird.f32 %v1655_v35  ;;  %vm643_vm14 = vweird.f32 %v1648_v3 }
 0x150   :  { %v620_v54 = vmul.f32 0.5, %v619_v7  ;;  %v629_v23 = vmul.f32 %v1655_v35, %v628_v13  ;;  %v616_v27 = vsel %vm1671_vm15, %v1581_v0, %v612_v18  ;;  %v350_v45 = vmul.f32 %v1681_v9, %v1642_v62  ;;  %vm635_vm11 = vmor %vm633_vm9, %vm634_vm10 }
 0x151   :  { %384 = vxpose.xlu2.b32.cont [10/16] (narrow) %v368_v59, 32  ;;  %v318_v59 = vsel %vm1637_vm0, %v1552_v21, %v314_v41  ;;  %v748_v21 = vmul.f32 %v606_v19, %v1332_v2  ;;  %v1679_v2 = vadd.f32 1e-12, %v543_v57  ;;  %v749_v40 = vmul.f32 %v616_v27, %v1329_v20 }
 0x152   :  { %v370_v46 = vmul.f32 %v318_v59, %v1233_v63  ;;  %v341_v63 = vmul.f32 %v1644_v42, %v340_v33  ;;  %v621_v55 = vsub.f32 1.5, %v620_v54  ;;  %v546_v60 = vpop.xlane.xlu1 %545  ;;  %v334_v4 = vmul.f32 %v1610_v12, %v333_v58  ;;  %v549_v33 = vpop.xlane.xlu0 %548 }
 0x153   :  { %v1688_v11 = vpop.eup %884  ;;  %886 = vrsqrt.f32 %v1679_v2  ;;  %v1709_v20 = vadd.f32 1e-12, %v546_v60  ;;  %v351_v7 = vmul.f32 %v1681_v9, %v350_v45  ;;  %vm346_vm0 = vweird.f32 %v1644_v42 }
 0x154   :  { %v342_v41 = vmul.f32 0.5, %v341_v63  ;;  %v638_v0 = vmul.f32 %v1688_v11, %v1648_v3  ;;  %v622_v26 = vmul.f32 %v1619_v48, %v621_v55  ;;  %v338_v59 = vsel %vm1703_vm7, %v1610_v12, %v334_v4  ;;  %vm347_vm13 = vmor %vm345_vm12, %vm346_vm0 }
 0x155   :  { %888 = vrsqrt.f32 %v1709_v20  ;;  %v352_v53 = vmul.f32 0.5, %v351_v7  ;;  %vm644_vm15 = vweird.f32 %v1688_v11  ;;  %vm356_vm1 = vweird.f32 %v1681_v9 }
 0x156   :  { %v639_v10 = vmul.f32 %v1688_v11, %v638_v0  ;;  %v626_v49 = vsel %vm625_vm8, %v1619_v48, %v622_v26  ;;  %vm355_vm2 = vweird.f32 %v1642_v62  ;;  %vm645_vm3 = vmor %vm643_vm14, %vm644_vm15  ;;  %vm653_vm5 = vweird.f32 %v1679_v2 }
 0x157   :  { %v750_v30 = vmul.f32 %v626_v49, %v1347_v24  ;;  %v353_v18 = vsub.f32 1.5, %v352_v53  ;;  %vm357_vm4 = vmor %vm355_vm2, %vm356_vm1  ;;  %vm663_vm8 = vweird.f32 %v1709_v20 }
 0x158   :  { %v640_v19 = vmul.f32 0.5, %v639_v10 }
 0x159   :  { %385 = vxpose.xlu2.b32.cont [11/16] (narrow) %v369_v1, 32  ;;  %v371_v1 = vmul.f32 %v328_v43, %v1257_v32  ;;  %v343_v32 = vsub.f32 1.5, %v342_v41  ;;  %v1713_v16 = vpop.eup %886 }
 0x15a   :  { %763 = vxpose.xlu0.b32.start [1/16] (narrow) %v747_v25, 32  ;;  %v630_v25 = vmul.f32 0.5, %v629_v23  ;;  %v648_v34 = vmul.f32 %v1713_v16, %v1679_v2  ;;  %v641_v24 = vsub.f32 1.5, %v640_v19  ;;  %v552_v63 = vpop.xlane.xlu1 %551  ;;  %vm654_vm6 = vweird.f32 %v1713_v16 }
 0x15b   :  { %v344_v48 = vmul.f32 %v1644_v42, %v343_v32  ;;  %v889_v17 = vpop.eup %888  ;;  %vm655_vm7 = vmor %vm653_vm5, %vm654_vm6 }
 0x15c   :  { %v631_v47 = vsub.f32 1.5, %v630_v25  ;;  %v649_v54 = vmul.f32 %v1713_v16, %v648_v34  ;;  %v658_v5 = vmul.f32 %v889_v17, %v1709_v20  ;;  %v642_v55 = vmul.f32 %v1688_v11, %v641_v24 }
 0x15d   :  { %v348_v13 = vsel %vm347_vm13, %v1644_v42, %v344_v48  ;;  %v354_v42 = vmul.f32 %v1681_v9, %v353_v18  ;;  %vm664_vm9 = vweird.f32 %v889_v17 }
 0x15e   :  { %v632_v12 = vmul.f32 %v1655_v35, %v631_v47  ;;  %v650_v22 = vmul.f32 0.5, %v649_v54  ;;  %v659_v3 = vmul.f32 %v889_v17, %v658_v5  ;;  %vm665_vm10 = vmor %vm663_vm8, %vm664_vm9 }
 0x15f   :  { %v358_v43 = vsel %vm357_vm4, %v1681_v9, %v354_v42 }
 0x160   :  { %v636_v57 = vsel %vm635_vm11, %v1655_v35, %v632_v12  ;;  %v646_v35 = vsel %vm645_vm3, %v1688_v11, %v642_v55  ;;  %v660_v58 = vmul.f32 0.5, %v659_v3  ;;  %v374_v62 = vmul.f32 %v358_v43, %v1278_v44 }
 0x161   :  { %386 = vxpose.xlu2.b32.cont [12/16] (narrow) %v370_v46, 32  ;;  %v372_v46 = vmul.f32 %v338_v59, %v1262_v6  ;;  %v373_v6 = vmul.f32 %v348_v13, %v1254_v29  ;;  %v751_v36 = vmul.f32 %v636_v57, %v1344_v8  ;;  %v580_v29 = vadd.f32 1e-12, %v552_v63 }
 0x162   :  { %764 = vxpose.xlu0.b32.cont [2/16] (narrow) %v748_v21, 32  ;;  %v579_v21 = vadd.f32 1e-12, %v549_v33  ;;  %v651_v8 = vsub.f32 1.5, %v650_v22  ;;  %v752_v27 = vmul.f32 %v646_v35, %v1361_v52  ;;  %v661_v11 = vsub.f32 1.5, %v660_v58 }
 0x163   :  { %vm683_vm13 = vweird.f32 %v580_v29 }
 0x164   :  { %890 = vrsqrt.f32 %v579_v21  ;;  %v662_v60 = vmul.f32 %v889_v17, %v661_v11  ;;  %vm673_vm0 = vweird.f32 %v579_v21 }
 0x165   :  { %892 = vrsqrt.f32 %v580_v29 }
 0x166   :  { %v666_v45 = vsel %vm665_vm10, %v889_v17, %v662_v60 }
 0x167   :  { %v754_v4 = vmul.f32 %v666_v45, %v1375_v61 }
 0x169   :  { %387 = vxpose.xlu2.b32.cont [13/16] (narrow) %v371_v1, 32  ;;  %v652_v1 = vmul.f32 %v1713_v16, %v651_v8 }
 0x16a   :  { %765 = vxpose.xlu0.b32.cont [3/16] (narrow) %v749_v40, 32  ;;  %v891_v23 = vpop.eup %890 }
 0x16b   :  { %v668_v41 = vmul.f32 %v891_v23, %v579_v21  ;;  %v656_v9 = vsel %vm655_vm7, %v1713_v16, %v652_v1  ;;  %v893_v25 = vpop.eup %892  ;;  %vm674_vm11 = vweird.f32 %v891_v23 }
 0x16c   :  { %v753_v2 = vmul.f32 %v656_v9, %v1358_v51  ;;  %v678_v0 = vmul.f32 %v893_v25, %v580_v29  ;;  %vm675_vm12 = vmor %vm673_vm0, %vm674_vm11  ;;  %vm684_vm14 = vweird.f32 %v893_v25 }
 0x16d   :  { %v669_v40 = vmul.f32 %v891_v23, %v668_v41  ;;  %vm685_vm15 = vmor %vm683_vm13, %vm684_vm14 }
 0x16e   :  { %v679_v26 = vmul.f32 %v893_v25, %v678_v0 }
 0x16f   :  { %v670_v52 = vmul.f32 0.5, %v669_v40 }
 0x170   :  { %v680_v56 = vmul.f32 0.5, %v679_v26 }
 0x171   :  { %388 = vxpose.xlu2.b32.cont [14/16] (narrow) %v372_v46, 32  ;;  %v671_v44 = vsub.f32 1.5, %v670_v52 }
 0x172   :  { %766 = vxpose.xlu0.b32.cont [4/16] (narrow) %v750_v30, 32  ;;  %v681_v47 = vsub.f32 1.5, %v680_v56 }
 0x173   :  { %v672_v32 = vmul.f32 %v891_v23, %v671_v44 }
 0x174   :  { %v682_v16 = vmul.f32 %v893_v25, %v681_v47 }
 0x175   :  { %v676_v10 = vsel %vm675_vm12, %v891_v23, %v672_v32 }
 0x176   :  { %v755_v49 = vmul.f32 %v676_v10, %v1372_v38  ;;  %v686_v19 = vsel %vm685_vm15, %v893_v25, %v682_v16 }
 0x177   :  { %v756_v46 = vmul.f32 %v686_v19, %v1385_v50 }
 0x179   :  { %389 = vxpose.xlu2.b32.cont [15/16] (narrow) %v373_v6, 32 }
 0x17a   :  { %767 = vxpose.xlu0.b32.cont [5/16] (narrow) %v751_v36, 32 }
 0x181   :  { %390 = vxpose.xlu2.b32.end [16/16] (narrow) %v374_v62, 32 }
 0x182   :  { %768 = vxpose.xlu0.b32.cont [6/16] (narrow) %v752_v27, 32 }
 0x18a   :  { %769 = vxpose.xlu0.b32.cont [7/16] (narrow) %v753_v2, 32 }
 0x192   :  { %770 = vxpose.xlu0.b32.cont [8/16] (narrow) %v754_v4, 32 }
 0x194   :  { %v555_v20 = vpop.xlane.xlu0 %554 }
 0x195   :  { %v581_v51 = vadd.f32 1e-12, %v555_v20 }
 0x197   :  { %894 = vrsqrt.f32 %v581_v51  ;;  %vm693_vm2 = vweird.f32 %v581_v51 }
 0x19a   :  { %771 = vxpose.xlu0.b32.cont [9/16] (narrow) %v755_v49, 32 }
 0x19c   :  { %v561_v59 = vpop.xlane.xlu0 %560 }
 0x19d   :  { %v558_v7 = vpop.xlane.xlu1 %557  ;;  %v895_v30 = vpop.eup %894  ;;  %v583_v48 = vadd.f32 1e-12, %v561_v59 }
 0x19e   :  { %v582_v61 = vadd.f32 1e-12, %v558_v7  ;;  %v688_v34 = vmul.f32 %v895_v30, %v581_v51  ;;  %vm694_vm1 = vweird.f32 %v895_v30 }
 0x19f   :  { %vm695_vm3 = vmor %vm693_vm2, %vm694_vm1  ;;  %vm713_vm8 = vweird.f32 %v583_v48 }
 0x1a0   :  { %896 = vrsqrt.f32 %v582_v61  ;;  %v689_v33 = vmul.f32 %v895_v30, %v688_v34  ;;  %vm703_vm5 = vweird.f32 %v582_v61 }
 0x1a1   :  { %898 = vrsqrt.f32 %v583_v48 }
 0x1a2   :  { %v690_v12 = vmul.f32 0.5, %v689_v33  ;;  %772 = vxpose.xlu0.b32.cont [10/16] (narrow) %v756_v46, 32  ;;  %v391_v40 = vpop.trf.xlu2 }
 0x1a3   :  { %407 = vst [vmem:[#allocation2] sm:$0xff] %v391_v40 }
 0x1a4   :  { %v691_v38 = vsub.f32 1.5, %v690_v12  ;;  %v567_v21 = vpop.xlane.xlu0 %566 }
 0x1a5   :  { %v564_v53 = vpop.xlane.xlu1 %563  ;;  %v585_v13 = vadd.f32 1e-12, %v567_v21 }
 0x1a6   :  { %v897_v24 = vpop.eup %896  ;;  %v584_v54 = vadd.f32 1e-12, %v564_v53  ;;  %v692_v18 = vmul.f32 %v895_v30, %v691_v38 }
 0x1a7   :  { %v899_v57 = vpop.eup %898  ;;  %v698_v17 = vmul.f32 %v897_v24, %v582_v61  ;;  %vm704_vm4 = vweird.f32 %v897_v24  ;;  %vm733_vm13 = vweird.f32 %v585_v13 }
 0x1a8   :  { %v708_v6 = vmul.f32 %v899_v57, %v583_v48  ;;  %900 = vrsqrt.f32 %v584_v54  ;;  %v696_v22 = vsel %vm695_vm3, %v895_v30, %v692_v18  ;;  %vm705_vm6 = vmor %vm703_vm5, %vm704_vm4  ;;  %vm714_vm7 = vweird.f32 %v899_v57 }
 0x1a9   :  { %v699_v36 = vmul.f32 %v897_v24, %v698_v17  ;;  %902 = vrsqrt.f32 %v585_v13  ;;  %v757_v50 = vmul.f32 %v696_v22, %v1430_v37  ;;  %vm715_vm9 = vmor %vm713_vm8, %vm714_vm7  ;;  %vm723_vm10 = vweird.f32 %v584_v54 }
 0x1aa   :  { %v709_v5 = vmul.f32 %v899_v57, %v708_v6 }
 0x1ab   :  { %v700_v63 = vmul.f32 0.5, %v699_v36  ;;  %773 = vxpose.xlu0.b32.cont [11/16] (narrow) %v757_v50, 32 }
 0x1ac   :  { %v710_v55 = vmul.f32 0.5, %v709_v5 }
 0x1ad   :  { %v701_v42 = vsub.f32 1.5, %v700_v63  ;;  %v570_v29 = vpop.xlane.xlu1 %569 }
 0x1ae   :  { %v901_v8 = vpop.eup %900  ;;  %v586_v3 = vadd.f32 1e-12, %v570_v29  ;;  %v711_v35 = vsub.f32 1.5, %v710_v55 }
 0x1af   :  { %v718_v23 = vmul.f32 %v901_v8, %v584_v54  ;;  %v702_v43 = vmul.f32 %v897_v24, %v701_v42  ;;  %v903_v27 = vpop.eup %902  ;;  %vm724_vm0 = vweird.f32 %v901_v8 }
 0x1b0   :  { %904 = vrsqrt.f32 %v586_v3  ;;  %v728_v1 = vmul.f32 %v903_v27, %v585_v13  ;;  %v712_v11 = vmul.f32 %v899_v57, %v711_v35  ;;  %vm725_vm11 = vmor %vm723_vm10, %vm724_vm0  ;;  %vm734_vm12 = vweird.f32 %v903_v27 }
 0x1b1   :  { %v719_v58 = vmul.f32 %v901_v8, %v718_v23  ;;  %v706_v41 = vsel %vm705_vm6, %v897_v24, %v702_v43  ;;  %vm735_vm14 = vmor %vm733_vm13, %vm734_vm12  ;;  %vm743_vm15 = vweird.f32 %v586_v3 }
 0x1b2   :  { %v758_v62 = vmul.f32 %v706_v41, %v1457_v28  ;;  %v729_v25 = vmul.f32 %v903_v27, %v728_v1  ;;  %v716_v2 = vsel %vm715_vm9, %v899_v57, %v712_v11 }
 0x1b3   :  { %v720_v37 = vmul.f32 0.5, %v719_v58  ;;  %v759_v0 = vmul.f32 %v716_v2, %v1450_v15 }
 0x1b4   :  { %774 = vxpose.xlu0.b32.cont [12/16] (narrow) %v758_v62, 32  ;;  %v730_v60 = vmul.f32 0.5, %v729_v25 }
 0x1b5   :  { %v721_v9 = vsub.f32 1.5, %v720_v37 }
 0x1b6   :  { %v905_v52 = vpop.eup %904  ;;  %v731_v26 = vsub.f32 1.5, %v730_v60 }
 0x1b7   :  { %v738_v44 = vmul.f32 %v905_v52, %v586_v3  ;;  %v722_v28 = vmul.f32 %v901_v8, %v721_v9  ;;  %vm744_vm1 = vweird.f32 %v905_v52 }
 0x1b8   :  { %v732_v20 = vmul.f32 %v903_v27, %v731_v26  ;;  %vm745_vm2 = vmor %vm743_vm15, %vm744_vm1 }
 0x1b9   :  { %v739_v45 = vmul.f32 %v905_v52, %v738_v44  ;;  %v726_v4 = vsel %vm725_vm11, %v901_v8, %v722_v28 }
 0x1ba   :  { %v760_v56 = vmul.f32 %v726_v4, %v1485_v39  ;;  %v736_v51 = vsel %vm735_vm14, %v903_v27, %v732_v20  ;;  %v392_v39 = vpop.trf.xlu2 }
 0x1bb   :  { %v740_v32 = vmul.f32 0.5, %v739_v45  ;;  %v761_v15 = vmul.f32 %v736_v51, %v1478_v14  ;;  %408 = vst [vmem:[#allocation2 + $0x8] sm:$0xff] %v392_v39 }
 0x1bc   :  { %775 = vxpose.xlu0.b32.cont [13/16] (narrow) %v759_v0, 32 }
 0x1bd   :  { %v741_v47 = vsub.f32 1.5, %v740_v32 }
 0x1bf   :  { %v742_v10 = vmul.f32 %v905_v52, %v741_v47 }
 0x1c1   :  { %v746_v49 = vsel %vm745_vm2, %v905_v52, %v742_v10 }
 0x1c2   :  { %v762_v16 = vmul.f32 %v746_v49, %v1510_v31  ;;  %v393_v7 = vpop.trf.xlu2 }
 0x1c3   :  { %409 = vst [vmem:[#allocation2 + $0x10] sm:$0xff] %v393_v7 }
 0x1c4   :  { %776 = vxpose.xlu0.b32.cont [14/16] (narrow) %v760_v56, 32 }
 0x1ca   :  { %v394_v14 = vpop.trf.xlu2 }
 0x1cb   :  { %410 = vst [vmem:[#allocation2 + $0x18] sm:$0xff] %v394_v14 }
 0x1cc   :  { %777 = vxpose.xlu0.b32.cont [15/16] (narrow) %v761_v15, 32  ;;  %811 = dma.vmem_to_hbm [thread:$0]  %s804_s21, 512, %s806_s23, [#allocation3], %s960_s24, %s960_s24, %s961_s25  }
 0x1d4   :  { %778 = vxpose.xlu0.b32.end [16/16] (narrow) %v762_v16, 32 }
 0x200   :  { %v779_v59 = vpop.trf.xlu0 }
 0x201   :  { %795 = vst [vmem:[#allocation4] sm:$0xff] %v779_v59 }
 0x208   :  { %v780_v31 = vpop.trf.xlu0 }
 0x209   :  { %796 = vst [vmem:[#allocation4 + $0x8] sm:$0xff] %v780_v31 }
 0x210   :  { %v781_v30 = vpop.trf.xlu0 }
 0x211   :  { %797 = vst [vmem:[#allocation4 + $0x10] sm:$0xff] %v781_v30 }
 0x218   :  { %v782_v61 = vpop.trf.xlu0 }
 0x219   :  { %798 = vst [vmem:[#allocation4 + $0x18] sm:$0xff] %v782_v61 }
 0x21a   :  { %824 = dma.vmem_to_hbm [thread:$0]  %s817_s27, 512, %s819_s30, [#allocation5], %s960_s24, %s960_s24, %s961_s25  }
 0x21b   :  { %954 = dma.done.wait [#allocation3], 512  }
 0x21c   :  { %955 = vsyncadd [#allocation3], 4294966784 }
 0x21d   :  { %956 = dma.done.wait [#allocation5], 512  }
 0x21e   :  { %957 = vsyncadd [#allocation5], 4294966784 }
 0x21f   :  { %833 = vsyncpa [#allocation3], 1 }
 0x220   :  { %834 = vsyncpa [#allocation5], 1 }

</bundles_post_ra>
